<compile_context>
chip_gen: v6e
topology: v6e:2x2x1
jax: 0.10.0
libtpu: 0.0.40
codegen_flags: <defaults>
</compile_context>

<pallas_src>
import jax
import jax.numpy as jnp
from jax.experimental import pallas as pl
from jax.experimental.pallas import tpu as pltpu


_NEG_FILL = -1e30  # finite "minus infinity" for class padding (exp -> 0, diffs -> 0)


def _rdrop_tile(l1_ref, l2_ref, tgt_ref, out_ref, kw):
    """One fused pass over a (tb, C) tile: softmax stats, CE gather, symmetric KL."""
    l1 = l1_ref[...].astype(jnp.float32)
    l2 = l2_ref[...].astype(jnp.float32)
    tb, c = l1.shape

    # Numerically stable softmax statistics for both logit sets.
    m1 = jnp.max(l1, axis=-1, keepdims=True)
    m2 = jnp.max(l2, axis=-1, keepdims=True)
    e1 = jnp.exp(l1 - m1)
    e2 = jnp.exp(l2 - m2)
    s1 = jnp.sum(e1, axis=-1, keepdims=True)
    s2 = jnp.sum(e2, axis=-1, keepdims=True)

    # Per-row exact reciprocals on the (tb,1) sums, then broadcast multiplies:
    # no full-(tb,C) divides on the VPU (approx=False keeps 1e-5 parity).
    inv1 = pl.reciprocal(s1, approx=False)
    inv2 = pl.reciprocal(s2, approx=False)
    p1 = e1 * inv1
    p2 = e2 * inv2

    # Cross-entropy per sample; the two target gathers are fused on (l1 + l2):
    #   ce = ((lse1 - l1[tgt]) + (lse2 - l2[tgt])) / 2
    lse1 = m1 + jnp.log(s1)
    lse2 = m2 + jnp.log(s2)
    cls_idx = jax.lax.broadcasted_iota(jnp.int32, (tb, c), 1)
    tgt_logits = jnp.sum(jnp.where(cls_idx == tgt_ref[...], l1 + l2, 0.0),
                         axis=-1, keepdims=True)
    ce = (lse1 + lse2 - tgt_logits) * 0.5

    # Symmetric KL with the logsumexp terms dropped algebraically:
    #   0.5*(KL(p2||p1) + KL(p1||p2)) = 0.5*sum((p1-p2)*(lp1-lp2))
    #                                 = 0.5*sum((p1-p2)*(l1-l2))   [sum_c(p1-p2) == 0]
    kl = 0.5 * jnp.sum((p1 - p2) * (l1 - l2), axis=-1, keepdims=True)

    out_ref[...] = ce + kw * kl


def _round_up(x, m):
    return ((x + m - 1) // m) * m


def _vmem_plan():
    """Return (per-step tiling budget, vmem_limit_bytes) for this chip generation."""
    cap = 64 * 1024 * 1024  # conservative default: assume a 64-MiB-VMEM part (v7x)
    try:
        cap = int(pltpu.get_tpu_info().vmem_capacity_bytes)
    except Exception:
        pass
    if cap >= 100 * 1024 * 1024:                    # v5e / v6e: 128 MiB physical VMEM
        return 64 * 1024 * 1024, 96 * 1024 * 1024
    return 28 * 1024 * 1024, 48 * 1024 * 1024       # v7x: 64 MiB physical VMEM


def _pick_tb(B, C, itemsize, vmem_budget_bytes):
    """Largest row tile fitting the VMEM budget; >=2 grid steps for dual-TC chips."""
    # Per row: 2 logits inputs x 2 pipeline buffers x C x itemsize (DMA buffers)
    #   + ~10 live (row, C) f32/int32 full-tile temporaries in the kernel body
    #     (l1, l2, e1, e2, p1, p2, l1-l2, iota, masked-gather, product)
    #   + the (row, 128)-padded int32 target and f32 output blocks (x2 buffers each).
    per_row = 4 * C * itemsize + 10 * C * 4 + 4 * 128 * 4
    tb = min(int(vmem_budget_bytes // max(per_row, 1)), 1024)
    if B >= 256 and tb >= 256:
        # Guarantee >= 2 grid steps so both TensorCores on dual-TC chips (v7x) get work.
        tb = min(tb, max(128, ((B // 2) // 128) * 128))
    # Round to a hardware-friendly granularity: multiples of 128 rows (also keeps
    # bf16 16-sublane packing well formed); 16-row granule for tiny batches.
    gran = 128 if (tb >= 128 and B >= 64) else 16
    tb = max(gran, (min(tb, _round_up(B, gran)) // gran) * gran)
    return int(tb)


def rdrop_loss(logits1, logits2, target, kl_weight=1.0, *, tb=None):
    """Per-sample R-Drop loss. logits: (B, C), target: (B,) int. Returns (B,) float32."""
    B, C = logits1.shape
    assert logits2.shape == (B, C)
    itemsize = jnp.dtype(logits1.dtype).itemsize

    # Pad the class dim to a lane multiple (128) with a large FINITE negative fill:
    # exp -> 0 and (l1-l2) -> 0 on padded columns (never -inf: inf-inf = NaN).
    Cp = _round_up(C, 128)
    if Cp != C:
        padc = ((0, 0), (0, Cp - C))
        logits1 = jnp.pad(logits1, padc, constant_values=_NEG_FILL)
        logits2 = jnp.pad(logits2, padc, constant_values=_NEG_FILL)

    budget, vmem_limit = _vmem_plan()
    if tb is None:
        tb = _pick_tb(B, Cp, itemsize, budget)

    # Pad the batch to a multiple of the row tile (padded rows are sliced off).
    Bp = _round_up(B, tb)
    if Bp != B:
        padb = Bp - B
        logits1 = jnp.pad(logits1, ((0, padb), (0, 0)))
        logits2 = jnp.pad(logits2, ((0, padb), (0, 0)))
        target = jnp.pad(target, (0, padb))

    tgt = target.reshape(Bp, 1).astype(jnp.int32)

    # Static python-float kl_weight -> compile-time constant (drops one operand and a
    # per-step SMEM read); keep the SMEM scalar path only for traced weights.
    static_kw = isinstance(kl_weight, (int, float)) and not isinstance(kl_weight, bool)
    if static_kw:
        kw_const = float(kl_weight)

        def kernel(l1_ref, l2_ref, tgt_ref, out_ref):
            _rdrop_tile(l1_ref, l2_ref, tgt_ref, out_ref, kw_const)

        extra_inputs = ()
        extra_specs = []
    else:
        def kernel(l1_ref, l2_ref, tgt_ref, kw_ref, out_ref):
            _rdrop_tile(l1_ref, l2_ref, tgt_ref, out_ref, kw_ref[0])

        extra_inputs = (jnp.asarray(kl_weight, dtype=jnp.float32).reshape(1),)
        extra_specs = [pl.BlockSpec(memory_space=pltpu.MemorySpace.SMEM)]

    out = pl.pallas_call(
        kernel,
        out_shape=jax.ShapeDtypeStruct((Bp, 1), jnp.float32),
        grid=(Bp // tb,),
        in_specs=[
            pl.BlockSpec((tb, Cp), lambda i: (i, 0)),   # logits1 tile (native dtype)
            pl.BlockSpec((tb, Cp), lambda i: (i, 0)),   # logits2 tile (native dtype)
            pl.BlockSpec((tb, 1), lambda i: (i, 0)),    # target column
        ] + extra_specs,
        out_specs=pl.BlockSpec((tb, 1), lambda i: (i, 0)),
        compiler_params=pltpu.CompilerParams(
            dimension_semantics=("parallel",),          # batch axis shards across TCs
            vmem_limit_bytes=vmem_limit,
        ),
    )(logits1, logits2, tgt, *extra_inputs)
    return out[:B, 0]


def _rdrop_ref(logits1, logits2, target, kl_weight=1.0):
    """Pure-JAX reference mirroring the PyTorch forward."""
    logits1 = logits1.astype(jnp.float32)
    logits2 = logits2.astype(jnp.float32)
    lp1 = jax.nn.log_softmax(logits1, axis=-1)
    lp2 = jax.nn.log_softmax(logits2, axis=-1)
    p1 = jnp.exp(lp1)
    p2 = jnp.exp(lp2)
    ce1 = -jnp.take_along_axis(lp1, target[:, None], axis=-1)[:, 0]
    ce2 = -jnp.take_along_axis(lp2, target[:, None], axis=-1)[:, 0]
    ce = (ce1 + ce2) / 2
    kl1 = jnp.sum(p2 * (lp2 - lp1), axis=-1)
    kl2 = jnp.sum(p1 * (lp1 - lp2), axis=-1)
    kl = (kl1 + kl2) / 2
    return ce + kl_weight * kl


if __name__ == "__main__":
    # RDrop has no learned parameters; inputs are two logit tensors + int targets.
    key = jax.random.PRNGKey(0)

    # Test 1: float32, C a lane multiple, static kl_weight.
    B, C = 16, 128
    k1, k2, k3, k4, k5, k6 = jax.random.split(key, 6)
    logits1 = jax.random.normal(k1, (B, C), dtype=jnp.float32)
    logits2 = jax.random.normal(k2, (B, C), dtype=jnp.float32)
    target = jax.random.randint(k3, (B,), 0, C, dtype=jnp.int32)
    loss = rdrop_loss(logits1, logits2, target, kl_weight=1.0)
    jax.block_until_ready(loss)
    ref = _rdrop_ref(logits1, logits2, target, kl_weight=1.0)
    assert loss.shape == (B,)
    assert jnp.allclose(loss, ref, atol=2e-5, rtol=2e-5), (loss, ref)

    # Test 2: bf16 logits, odd batch and non-128 class count (exercises both padding paths).
    B2, C2 = 13, 96
    l1b = jax.random.normal(k4, (B2, C2), dtype=jnp.float32).astype(jnp.bfloat16)
    l2b = jax.random.normal(k5, (B2, C2), dtype=jnp.float32).astype(jnp.bfloat16)
    tgt2 = jax.random.randint(k6, (B2,), 0, C2, dtype=jnp.int32)
    loss2 = rdrop_loss(l1b, l2b, tgt2, kl_weight=0.5)
    jax.block_until_ready(loss2)
    ref2 = _rdrop_ref(l1b, l2b, tgt2, kl_weight=0.5)
    assert loss2.shape == (B2,)
    assert jnp.allclose(loss2, ref2, atol=2e-5, rtol=2e-5), (loss2, ref2)

    # Test 3: traced (array-valued) kl_weight exercises the SMEM-scalar path.
    kw = jnp.asarray(2.0, dtype=jnp.float32)
    loss3 = rdrop_loss(logits1, logits2, target, kl_weight=kw)
    jax.block_until_ready(loss3)
    ref3 = _rdrop_ref(logits1, logits2, target, kl_weight=2.0)
    assert jnp.allclose(loss3, ref3, atol=2e-5, rtol=2e-5), (loss3, ref3)

    print("KERNEL_OK")
</pallas_src>

<mosaic_0001>
module attributes {stable_mosaic.version = 11 : i64} {
  func.func @kernel(%arg0: i32, %arg1: memref<16x128xf32, #tpu.memory_space<vmem>>, %arg2: memref<16x128xf32, #tpu.memory_space<vmem>>, %arg3: memref<16x1xi32, #tpu.memory_space<vmem>>, %arg4: memref<16x1xf32, #tpu.memory_space<vmem>>) attributes {dimension_semantics = [#tpu.dimension_semantics<parallel>], iteration_bounds = array<i64: 1>, scalar_prefetch = 0 : i64, scratch_operands = 0 : i64, tpu.core_type = #tpu.core_type<tc>, window_params = [{transform_indices = @transform_0, window_bounds = array<i64: 16, 128>}, {transform_indices = @transform_1, window_bounds = array<i64: 16, 128>}, {transform_indices = @transform_2, window_bounds = array<i64: 16, 1>}, {transform_indices = @transform_3, window_bounds = array<i64: 16, 1>}]} {
    %c0 = arith.constant 0 : index
    %c0_0 = arith.constant 0 : index
    %0 = vector.load %arg1[%c0, %c0_0] : memref<16x128xf32, #tpu.memory_space<vmem>>, vector<16x128xf32>
    %c0_1 = arith.constant 0 : index
    %c0_2 = arith.constant 0 : index
    %1 = vector.load %arg2[%c0_1, %c0_2] : memref<16x128xf32, #tpu.memory_space<vmem>>, vector<16x128xf32>
    %cst = arith.constant dense<0xFF800000> : vector<16xf32>
    %2 = vector.multi_reduction <maximumf>, %0, %cst [1] : vector<16x128xf32> to vector<16xf32>
    %3 = vector.shape_cast %2 : vector<16xf32> to vector<16x1xf32>
    %cst_3 = arith.constant dense<0xFF800000> : vector<16xf32>
    %4 = vector.multi_reduction <maximumf>, %1, %cst_3 [1] : vector<16x128xf32> to vector<16xf32>
    %5 = vector.shape_cast %4 : vector<16xf32> to vector<16x1xf32>
    %6 = vector.broadcast %3 : vector<16x1xf32> to vector<16x128xf32>
    %7 = arith.subf %0, %6 : vector<16x128xf32>
    %8 = math.exp %7 : vector<16x128xf32>
    %9 = vector.broadcast %5 : vector<16x1xf32> to vector<16x128xf32>
    %10 = arith.subf %1, %9 : vector<16x128xf32>
    %11 = math.exp %10 : vector<16x128xf32>
    %cst_4 = arith.constant dense<0.000000e+00> : vector<16xf32>
    %12 = vector.multi_reduction <add>, %8, %cst_4 [1] : vector<16x128xf32> to vector<16xf32>
    %13 = vector.shape_cast %12 : vector<16xf32> to vector<16x1xf32>
    %cst_5 = arith.constant dense<0.000000e+00> : vector<16xf32>
    %14 = vector.multi_reduction <add>, %11, %cst_5 [1] : vector<16x128xf32> to vector<16xf32>
    %15 = vector.shape_cast %14 : vector<16xf32> to vector<16x1xf32>
    %16 = tpu.reciprocal %13 : vector<16x1xf32> -> vector<16x1xf32>
    %17 = tpu.reciprocal %15 : vector<16x1xf32> -> vector<16x1xf32>
    %18 = vector.broadcast %16 : vector<16x1xf32> to vector<16x128xf32>
    %19 = arith.mulf %8, %18 : vector<16x128xf32>
    %20 = vector.broadcast %17 : vector<16x1xf32> to vector<16x128xf32>
    %21 = arith.mulf %11, %20 : vector<16x128xf32>
    %22 = math.log %13 : vector<16x1xf32>
    %23 = arith.addf %3, %22 : vector<16x1xf32>
    %24 = math.log %15 : vector<16x1xf32>
    %25 = arith.addf %5, %24 : vector<16x1xf32>
    %26 = tpu.iota {dimensions = array<i32: 1>} : vector<16x128xi32>
    %c0_6 = arith.constant 0 : index
    %c0_7 = arith.constant 0 : index
    %27 = vector.load %arg3[%c0_6, %c0_7] : memref<16x1xi32, #tpu.memory_space<vmem>>, vector<16x1xi32>
    %28 = vector.broadcast %27 : vector<16x1xi32> to vector<16x128xi32>
    %29 = arith.cmpi eq, %26, %28 : vector<16x128xi32>
    %30 = arith.addf %0, %1 : vector<16x128xf32>
    %cst_8 = arith.constant 0.000000e+00 : f32
    %31 = vector.broadcast %cst_8 : f32 to vector<16x128xf32>
    %32 = arith.select %29, %30, %31 : vector<16x128xi1>, vector<16x128xf32>
    %cst_9 = arith.constant dense<0.000000e+00> : vector<16xf32>
    %33 = vector.multi_reduction <add>, %32, %cst_9 [1] : vector<16x128xf32> to vector<16xf32>
    %34 = vector.shape_cast %33 : vector<16xf32> to vector<16x1xf32>
    %35 = arith.addf %23, %25 : vector<16x1xf32>
    %36 = arith.subf %35, %34 : vector<16x1xf32>
    %cst_10 = arith.constant 5.000000e-01 : f32
    %37 = vector.broadcast %cst_10 : f32 to vector<16x1xf32>
    %38 = arith.mulf %36, %37 : vector<16x1xf32>
    %39 = arith.subf %19, %21 : vector<16x128xf32>
    %40 = arith.subf %0, %1 : vector<16x128xf32>
    %41 = arith.mulf %39, %40 : vector<16x128xf32>
    %cst_11 = arith.constant dense<0.000000e+00> : vector<16xf32>
    %42 = vector.multi_reduction <add>, %41, %cst_11 [1] : vector<16x128xf32> to vector<16xf32>
    %43 = vector.shape_cast %42 : vector<16xf32> to vector<16x1xf32>
    %cst_12 = arith.constant 5.000000e-01 : f32
    %44 = vector.broadcast %cst_12 : f32 to vector<16x1xf32>
    %45 = arith.mulf %44, %43 : vector<16x1xf32>
    %cst_13 = arith.constant 1.000000e+00 : f32
    %46 = vector.broadcast %cst_13 : f32 to vector<16x1xf32>
    %47 = arith.mulf %46, %45 : vector<16x1xf32>
    %48 = arith.addf %38, %47 : vector<16x1xf32>
    %c0_14 = arith.constant 0 : index
    %c0_15 = arith.constant 0 : index
    %49 = vector.load %arg4[%c0_14, %c0_15] : memref<16x1xf32, #tpu.memory_space<vmem>>, vector<16x1xf32>
    tpu.vector_store %arg4[%c0_14, %c0_15], %48 {strides = array<i32>} : memref<16x1xf32, #tpu.memory_space<vmem>>, vector<16x1xf32>,
    return
  }
  func.func @transform_0(%arg0: i32) -> (i32, i32) {
    %c0_i32 = arith.constant 0 : i32
    %c0_i32_0 = arith.constant 0 : i32
    return %arg0, %c0_i32 : i32, i32
  }
  func.func @transform_1(%arg0: i32) -> (i32, i32) {
    %c0_i32 = arith.constant 0 : i32
    %c0_i32_0 = arith.constant 0 : i32
    return %arg0, %c0_i32 : i32, i32
  }
  func.func @transform_2(%arg0: i32) -> (i32, i32) {
    %c0_i32 = arith.constant 0 : i32
    %c0_i32_0 = arith.constant 0 : i32
    return %arg0, %c0_i32 : i32, i32
  }
  func.func @transform_3(%arg0: i32) -> (i32, i32) {
    %c0_i32 = arith.constant 0 : i32
    %c0_i32_0 = arith.constant 0 : i32
    return %arg0, %c0_i32 : i32, i32
  }
}

</mosaic_0001>

<bundles_post_ra>
// kernel: tpu_custom_call.1
= control target key start
LH: loop header
LB: loop body
LE: loop exit
PB: predicated region body
PF: predicated region fallthrough
CT: control target
= control target key end

     0   :  { %8 = vsyncpa [#allocation3], 0  ;;  %s180_s12 = smov [#allocation2]   ;;  %s265_s0 = inlined_call_operand.vmem [shape: f32[16,128], index: 0, kind: input, shape index: {}]   ;;  %s266_s1 = inlined_call_operand.hbm [shape: f32[16,128], index: 1, kind: input, shape index: {}]   ;;  %s267_s2 = inlined_call_operand.vmem [shape: s32[16,1], index: 2, kind: input, shape index: {}]   ;;  %s268_s3 = inlined_call_operand.vmem [shape: f32[16,1], index: 3, kind: output, shape index: {}]  }
   0x1   :  { %s16_s13 = sshll.u32 %s180_s12, 4  ;;  %s17_s13 = int_to_ptr.vmem [resolvable:$true] %s16_s13 }
   0x2   :  { %s166_s14 = scalar_lea.vmem %s17_s13, 256  ;;  %p171_p1 = scmp.lt.s32.totalorder %s17_s13, %s17_s13 }
   0x3   :  { %p167_p0 = scmp.ne.s32.totalorder %s17_s13, %s166_s14  ;;  %p172_p2 = scmp.lt.s32.totalorder %s166_s14, %s166_s14 }
   0x5   :  { %p173_p3 = por %p172_p2, %p171_p1 }
   0x7   :  { %p174_p4 = pnand %p173_p3, %p167_p0 }
   0x9   :  { %177 = shalt.err (!%p174_p4)
}
   0xa   :  { %s181_s15 = smov 128   ;;  %s182_s16 = smov 8  }
   0xb   :  { %22 = dma.hbm_to_vmem [thread:$0]  %s266_s1, 256, %s17_s13, [#allocation3], %s181_s15, %s181_s15, %s182_s16  }
   0xc   :  { %178 = dma.done.wait [#allocation3], 256  }
   0xd   :  { %179 = vsyncadd [#allocation3], 4294967040  ;;  %v210_v0 = vld [vmem:[%s265_s0] sm:$0xff]  ;;  %v219_v2 = vld [vmem:[%s265_s0 + $0x8] sm:$0xff]  ;;  %v183_v4 = vmov 0   ;;  %v80_v26 = vlaneseq  ;;  %vm120_vm2 = vcmask 7168  }
   0xe   :  { %v212_v1 = vld [vmem:[#allocation2] sm:$0xff]  ;;  %32 = vmax.xlane.f32.xlu0 %v210_v0  ;;  %v221_v3 = vld [vmem:[#allocation2 + $0x8] sm:$0xff]  ;;  %133 = vset.pattern.permute.xlu1 %v183_v4 }
   0xf   :  { %36 = vmax.xlane.f32.xlu1 %v212_v1  ;;  %132 = vset.pattern.permute.xlu0 %v183_v4  ;;  %v83_v21 = vld [vmem:[%s267_s2 + $0x8] sm:$0xff]  ;;  %v82_v22 = vld [vmem:[%s267_s2] sm:$0xff]  ;;  %v81_v28 = vand.u32 127, %v80_v26  ;;  %v93_v29 = vadd.f32 %v221_v3, %v219_v2  ;;  %v92_v30 = vadd.f32 %v212_v1, %v210_v0  ;;  %v108_v44 = vsub.f32 %v210_v0, %v212_v1 }
  0x10   :  { %v109_v52 = vsub.f32 %v219_v2, %v221_v3 }
  0x12   :  { %34 = vmax.xlane.f32.xlu0 %v219_v2 }
  0x13   :  { %38 = vmax.xlane.f32.xlu1 %v221_v3 }
  0x97   :  { %v225_v5 = vpop.xlane.xlu0 %32 }
  0x98   :  { %v227_v6 = vpop.xlane.xlu1 %36  ;;  %v40_v7 = vsub.f32 %v210_v0, %v225_v5 }
  0x99   :  { %v46_v8 = vsub.f32 %v212_v1, %v227_v6 }
  0x9a   :  { %v42_v9 = vmul.f32 1.442695, %v40_v7 }
  0x9b   :  { %v48_v10 = vmul.f32 1.442695, %v46_v8  ;;  %v233_v11 = vpop.xlane.xlu0 %34 }
  0x9c   :  { %v235_v12 = vpop.xlane.xlu1 %38  ;;  %134 = vpow2.f32 %v42_v9  ;;  %v41_v13 = vsub.f32 %v219_v2, %v233_v11 }
  0x9d   :  { %v47_v14 = vsub.f32 %v221_v3, %v235_v12  ;;  %136 = vpow2.f32 %v48_v10 }
  0x9e   :  { %v44_v15 = vmul.f32 1.442695, %v41_v13 }
  0x9f   :  { %v50_v16 = vmul.f32 1.442695, %v47_v14 }
  0xa0   :  { %138 = vpow2.f32 %v44_v15 }
  0xa1   :  { %140 = vpow2.f32 %v50_v16 }
  0xa9   :  { %v135_v17 = vpop.eup %134 }
  0xaa   :  { %52 = vadd.xlane.f32.xlu0 %v135_v17  ;;  %v137_v18 = vpop.eup %136 }
  0xad   :  { %v139_v19 = vpop.eup %138 }
  0xae   :  { %56 = vadd.xlane.f32.xlu0 %v137_v18  ;;  %54 = vadd.xlane.f32.xlu1 %v139_v19  ;;  %v141_v20 = vpop.eup %140 }
  0xb2   :  { %58 = vadd.xlane.f32.xlu1 %v141_v20 }
  0xc3   :  { %88 = vperm.xlu1 %133, %v83_v21  }
  0xc4   :  { %85 = vperm.xlu0 %132, %v82_v22  }
 0x133   :  { %v53_v23 = vpop.xlane.xlu0 %52 }
 0x134   :  { %142 = vrcp.f32 %v53_v23 }
 0x135   :  { %144 = vlog2.f32 %v53_v23 }
 0x137   :  { %v55_v24 = vpop.xlane.xlu1 %54  ;;  %v57_v25 = vpop.xlane.xlu0 %56 }
 0x138   :  { %146 = vrcp.f32 %v55_v24 }
 0x139   :  { %148 = vlog2.f32 %v55_v24 }
 0x13a   :  { %150 = vrcp.f32 %v57_v25 }
 0x13b   :  { %152 = vlog2.f32 %v57_v25  ;;  %v59_v27 = vpop.xlane.xlu1 %58 }
 0x13c   :  { %154 = vrcp.f32 %v59_v27 }
 0x13d   :  { %156 = vlog2.f32 %v59_v27 }
 0x13f   :  { %v89_v31 = vpop.permute.xlu1 %88  ;;  %v86_v32 = vpop.permute.xlu0 %85 }
 0x140   :  { %vm91_vm0 = vcmp.eq.s32.totalorder %v81_v28, %v89_v31  ;;  %vm90_vm1 = vcmp.eq.s32.totalorder %v81_v28, %v86_v32 }
 0x141   :  { %v95_v33 = vsel %vm91_vm0, %v93_v29, 0.0  ;;  %v94_v34 = vsel %vm90_vm1, %v92_v30, 0.0  ;;  %v143_v35 = vpop.eup %142 }
 0x142   :  { %98 = vadd.xlane.f32.xlu0 %v95_v33  ;;  %96 = vadd.xlane.f32.xlu1 %v94_v34  ;;  %v145_v36 = vpop.eup %144  ;;  %v64_v42 = vmul.f32 %v143_v35, %v135_v17 }
 0x143   :  { %v69_v40 = vmul.f32 0.6931472, %v145_v36 }
 0x145   :  { %v147_v37 = vpop.eup %146  ;;  %v72_v54 = vadd.f32 %v69_v40, %v225_v5 }
 0x146   :  { %v149_v38 = vpop.eup %148  ;;  %v65_v50 = vmul.f32 %v147_v37, %v139_v19 }
 0x147   :  { %v151_v39 = vpop.eup %150  ;;  %v71_v46 = vmul.f32 0.6931472, %v149_v38 }
 0x148   :  { %v153_v41 = vpop.eup %152  ;;  %v66_v43 = vmul.f32 %v151_v39, %v137_v18 }
 0x149   :  { %v155_v45 = vpop.eup %154  ;;  %v75_v47 = vmul.f32 0.6931472, %v153_v41  ;;  %v73_v58 = vadd.f32 %v71_v46, %v233_v11 }
 0x14a   :  { %v157_v48 = vpop.eup %156  ;;  %v106_v49 = vsub.f32 %v64_v42, %v66_v43  ;;  %v67_v51 = vmul.f32 %v155_v45, %v141_v20 }
 0x14b   :  { %v77_v53 = vmul.f32 0.6931472, %v157_v48  ;;  %v78_v55 = vadd.f32 %v75_v47, %v227_v6 }
 0x14c   :  { %v110_v56 = vmul.f32 %v108_v44, %v106_v49  ;;  %v107_v57 = vsub.f32 %v65_v50, %v67_v51 }
 0x14d   :  { %v79_v59 = vadd.f32 %v77_v53, %v235_v12  ;;  %v100_v60 = vadd.f32 %v78_v55, %v72_v54 }
 0x14e   :  { %112 = vadd.xlane.f32.xlu1 %v110_v56  ;;  %v111_v61 = vmul.f32 %v109_v52, %v107_v57 }
 0x14f   :  { %v101_v62 = vadd.f32 %v79_v59, %v73_v58 }
 0x152   :  { %114 = vadd.xlane.f32.xlu1 %v111_v61 }
 0x1cb   :  { %v97_v63 = vpop.xlane.xlu1 %96  ;;  %v99_v1 = vpop.xlane.xlu0 %98 }
 0x1cc   :  { %v102_v0 = vsub.f32 %v100_v60, %v97_v63  ;;  %v103_v3 = vsub.f32 %v101_v62, %v99_v1 }
 0x1ce   :  { %v104_v4 = vmul.f32 0.5, %v102_v0  ;;  %v105_v8 = vmul.f32 0.5, %v103_v3 }
 0x1d7   :  { %v113_v2 = vpop.xlane.xlu1 %112 }
 0x1d8   :  { %v116_v5 = vmul.f32 0.5, %v113_v2 }
 0x1da   :  { %v118_v6 = vadd.f32 %v116_v5, %v104_v4 }
 0x1db   :  { %v115_v7 = vpop.xlane.xlu1 %114 }
 0x1dc   :  { %121 = vst.msk [vmem:[%s268_s3] sm:$0xff] %vm120_vm2, %v118_v6  ;;  %v117_v9 = vmul.f32 0.5, %v115_v7 }
 0x1de   :  { %v119_v10 = vadd.f32 %v117_v9, %v105_v8 }
 0x1e0   :  { %122 = vst.msk [vmem:[%s268_s3 + $0x8] sm:$0xff] %vm120_vm2, %v119_v10 }
 0x1e1   :  { %127 = vsyncpa [#allocation3], 1 }

</bundles_post_ra>
